<compile_context>
chip_gen: v7x
topology: tpu7x:2x2x1
jax: 0.10.0
libtpu: 0.0.40
codegen_flags: <defaults>
</compile_context>

<pallas_src>
import functools

import jax
import jax.numpy as jnp
from jax.experimental import pallas as pl
from jax.experimental.pallas import tpu as pltpu


def _mhsa_kernel(num_heads, head_dim,
                 q_ref, k_ref, v_ref,
                 wq_ref, bq_ref, wk_ref, bk_ref, wv_ref, bv_ref,
                 wo_ref, bo_ref,
                 attn_ref, out_ref):
    # q_ref/k_ref/v_ref blocks: (1, H, S, hd)
    # attn_ref block:           (1, H, S, S)
    # out_ref block:            (1, S, C)
    h = num_heads
    hd = head_dim

    q = q_ref[0]                      # (H, S, hd)
    k = k_ref[0]
    v = v_ref[0]
    s = q.shape[1]

    wq_t = wq_ref[...]                # (hd, hd), already transposed in wrapper
    wk_t = wk_ref[...]
    wv_t = wv_ref[...]
    bq = bq_ref[...]                  # (1, hd)
    bk = bk_ref[...]
    bv = bv_ref[...]
    wo_t = wo_ref[...]                # (H, hd, C) = Wo^T split per head
    bo = bo_ref[...]                  # (1, C)

    # --- fused per-head projections: one matmul each (heads folded into M) ---
    def project(x, w_t, b):
        x2 = x.reshape(h * s, hd)                                  # free merge of leading dims
        y = jnp.dot(x2, w_t, preferred_element_type=jnp.float32) + b
        return y.reshape(h, s, hd)                                 # free split back

    qp = project(q, wq_t, bq)
    kp = project(k, wk_t, bk)
    vp = project(v, wv_t, bv)

    # --- batched attention over the heads axis (leading batch dim) ---
    inv_scale = 1.0 / (hd ** 0.5)
    scores = jnp.einsum('hqd,hkd->hqk', qp, kp,
                        preferred_element_type=jnp.float32) * inv_scale   # (H, S, S)
    s_max = jnp.max(scores, axis=-1, keepdims=True)
    e = jnp.exp(scores - s_max)
    denom = jnp.sum(e, axis=-1, keepdims=True)
    w = e * pl.reciprocal(denom, approx=True)        # EUP reciprocal, not VALU divide

    attn_ref[0] = w                                  # single coalesced store (all heads)

    ctx = jnp.einsum('hqk,hkd->hqd', w, vp,
                     preferred_element_type=jnp.float32)                  # (H, S, hd)

    # --- output projection with heads kept batched (no concat, no transpose) ---
    per_head = jnp.einsum('hsd,hdc->hsc', ctx, wo_t,
                          preferred_element_type=jnp.float32)             # (H, S, C)
    out_ref[0] = jnp.sum(per_head, axis=0) + bo      # one wide lane-dense store


def multi_head_self_attention(q, k, v, params, num_heads):
    bs, seq, emb = q.shape
    assert emb % num_heads == 0
    head_dim = emb // num_heads

    # ---- wrapper-side layout plumbing (free) ----
    def split_heads(x):                    # (bs, S, C) -> (bs, H, S, hd)
        return x.reshape(bs, seq, num_heads, head_dim).transpose(0, 2, 1, 3)

    qh, kh, vh = split_heads(q), split_heads(k), split_heads(v)

    wq_t = params["wq_w"].T                               # (hd, hd)
    wk_t = params["wk_w"].T
    wv_t = params["wv_w"].T
    bq = params["wq_b"].reshape(1, head_dim)
    bk = params["wk_b"].reshape(1, head_dim)
    bv = params["wv_b"].reshape(1, head_dim)
    wo_t = params["wo_w"].T.reshape(num_heads, head_dim, emb)   # (H, hd, C)
    bo = params["wo_b"].reshape(1, emb)

    kernel = functools.partial(_mhsa_kernel, num_heads, head_dim)

    def full_spec(shape):
        return pl.BlockSpec(shape, lambda b: tuple(0 for _ in shape))

    attn_w, out = pl.pallas_call(
        kernel,
        out_shape=(
            jax.ShapeDtypeStruct((bs, num_heads, seq, seq), jnp.float32),
            jax.ShapeDtypeStruct((bs, seq, emb), jnp.float32),
        ),
        grid_spec=pltpu.PrefetchScalarGridSpec(
            num_scalar_prefetch=0,
            grid=(bs,),          # >= 2 parallel steps keeps both v7x TCs busy
            in_specs=[
                pl.BlockSpec((1, num_heads, seq, head_dim), lambda b: (b, 0, 0, 0)),  # q
                pl.BlockSpec((1, num_heads, seq, head_dim), lambda b: (b, 0, 0, 0)),  # k
                pl.BlockSpec((1, num_heads, seq, head_dim), lambda b: (b, 0, 0, 0)),  # v
                full_spec((head_dim, head_dim)),          # wq^T
                full_spec((1, head_dim)),                 # bq
                full_spec((head_dim, head_dim)),          # wk^T
                full_spec((1, head_dim)),                 # bk
                full_spec((head_dim, head_dim)),          # wv^T
                full_spec((1, head_dim)),                 # bv
                full_spec((num_heads, head_dim, emb)),    # wo^T per head
                full_spec((1, emb)),                      # bo
            ],
            out_specs=[
                pl.BlockSpec((1, num_heads, seq, seq), lambda b: (b, 0, 0, 0)),
                pl.BlockSpec((1, seq, emb), lambda b: (b, 0, 0)),
            ],
        ),
        compiler_params=pltpu.CompilerParams(
            dimension_semantics=("parallel",),
            vmem_limit_bytes=32 * 1024 * 1024,
        ),
    )(qh, kh, vh, wq_t, bq, wk_t, bk, wv_t, bv, wo_t, bo)
    return attn_w, out


def _reference(q, k, v, params, num_heads):
    """Pure-JAX reproduction of the PyTorch forward for verification."""
    bs, seq, emb = q.shape
    hd = emb // num_heads

    def split(x):  # (bs, seq, emb) -> (bs, nh, seq, hd)
        return x.reshape(bs, seq, num_heads, hd).transpose(0, 2, 1, 3)

    qh = split(q) @ params["wq_w"].T + params["wq_b"]
    kh = split(k) @ params["wk_w"].T + params["wk_b"]
    vh = split(v) @ params["wv_w"].T + params["wv_b"]

    s = qh @ kh.transpose(0, 1, 3, 2) / (hd ** 0.5)
    w = jax.nn.softmax(s, axis=-1)
    o = w @ vh                                            # (bs, nh, seq, hd)
    o = o.transpose(0, 2, 1, 3).reshape(bs, seq, emb)
    o = o @ params["wo_w"].T + params["wo_b"]
    return w, o


if __name__ == "__main__":
    # Small shapes consistent with the module:
    bs, img_sz, emb, num_heads = 2, 16, 32, 4
    head_dim = emb // num_heads

    key = jax.random.PRNGKey(0)
    keys = jax.random.split(key, 12)

    def unif(k_, shape, fan_in):
        bound = 1.0 / (fan_in ** 0.5)
        return jax.random.uniform(k_, shape, jnp.float32, -bound, bound)

    params = {
        "wq_w": unif(keys[0], (head_dim, head_dim), head_dim),
        "wq_b": unif(keys[1], (head_dim,), head_dim),
        "wk_w": unif(keys[2], (head_dim, head_dim), head_dim),
        "wk_b": unif(keys[3], (head_dim,), head_dim),
        "wv_w": unif(keys[4], (head_dim, head_dim), head_dim),
        "wv_b": unif(keys[5], (head_dim,), head_dim),
        "wo_w": unif(keys[6], (emb, emb), emb),
        "wo_b": unif(keys[7], (emb,), emb),
    }

    q = jax.random.normal(keys[8], (bs, img_sz, emb), jnp.float32)
    k = jax.random.normal(keys[9], (bs, img_sz, emb), jnp.float32)
    v = jax.random.normal(keys[10], (bs, img_sz, emb), jnp.float32)

    attn_w, out = multi_head_self_attention(q, k, v, params, num_heads)
    jax.block_until_ready((attn_w, out))

    ref_w, ref_o = _reference(q, k, v, params, num_heads)
    # Slightly loosened tolerance: softmax normalization uses the EUP
    # approximate reciprocal (pl.reciprocal(approx=True)); everything else is
    # fp32 with fp32 MXU accumulation.
    assert jnp.allclose(attn_w, ref_w, atol=1e-2, rtol=1e-2)
    assert jnp.allclose(out, ref_o, atol=1e-2, rtol=1e-2)

    print("KERNEL_OK")
</pallas_src>

<mosaic_0001>
module attributes {stable_mosaic.version = 11 : i64} {
  func.func @_mhsa_kernel(%arg0: i32, %arg1: memref<1x4x16x8xf32, #tpu.memory_space<vmem>>, %arg2: memref<1x4x16x8xf32, #tpu.memory_space<vmem>>, %arg3: memref<1x4x16x8xf32, #tpu.memory_space<vmem>>, %arg4: memref<8x8xf32, #tpu.memory_space<vmem>>, %arg5: memref<1x8xf32, #tpu.memory_space<vmem>>, %arg6: memref<8x8xf32, #tpu.memory_space<vmem>>, %arg7: memref<1x8xf32, #tpu.memory_space<vmem>>, %arg8: memref<8x8xf32, #tpu.memory_space<vmem>>, %arg9: memref<1x8xf32, #tpu.memory_space<vmem>>, %arg10: memref<4x8x32xf32, #tpu.memory_space<vmem>>, %arg11: memref<1x32xf32, #tpu.memory_space<vmem>>, %arg12: memref<1x4x16x16xf32, #tpu.memory_space<vmem>>, %arg13: memref<1x16x32xf32, #tpu.memory_space<vmem>>) attributes {dimension_semantics = [#tpu.dimension_semantics<parallel>], iteration_bounds = array<i64: 2>, scalar_prefetch = 0 : i64, scratch_operands = 0 : i64, tpu.core_type = #tpu.core_type<tc>, window_params = [{transform_indices = @transform_0, window_bounds = array<i64: 1, 4, 16, 8>}, {transform_indices = @transform_1, window_bounds = array<i64: 1, 4, 16, 8>}, {transform_indices = @transform_2, window_bounds = array<i64: 1, 4, 16, 8>}, {pipeline_mode = #tpu.pipeline_mode<synchronous>, transform_indices = @transform_3, window_bounds = array<i64: 8, 8>}, {pipeline_mode = #tpu.pipeline_mode<synchronous>, transform_indices = @transform_4, window_bounds = array<i64: 1, 8>}, {pipeline_mode = #tpu.pipeline_mode<synchronous>, transform_indices = @transform_5, window_bounds = array<i64: 8, 8>}, {pipeline_mode = #tpu.pipeline_mode<synchronous>, transform_indices = @transform_6, window_bounds = array<i64: 1, 8>}, {pipeline_mode = #tpu.pipeline_mode<synchronous>, transform_indices = @transform_7, window_bounds = array<i64: 8, 8>}, {pipeline_mode = #tpu.pipeline_mode<synchronous>, transform_indices = @transform_8, window_bounds = array<i64: 1, 8>}, {pipeline_mode = #tpu.pipeline_mode<synchronous>, transform_indices = @transform_9, window_bounds = array<i64: 4, 8, 32>}, {pipeline_mode = #tpu.pipeline_mode<synchronous>, transform_indices = @transform_10, window_bounds = array<i64: 1, 32>}, {transform_indices = @transform_11, window_bounds = array<i64: 1, 4, 16, 16>}, {transform_indices = @transform_12, window_bounds = array<i64: 1, 16, 32>}]} {
    %c0 = arith.constant 0 : index
    %c0_0 = arith.constant 0 : index
    %c0_1 = arith.constant 0 : index
    %c0_2 = arith.constant 0 : index
    %0 = vector.load %arg1[%c0, %c0_0, %c0_1, %c0_2] : memref<1x4x16x8xf32, #tpu.memory_space<vmem>>, vector<1x4x16x8xf32>
    %1 = vector.shape_cast %0 : vector<1x4x16x8xf32> to vector<4x16x8xf32>
    %c0_3 = arith.constant 0 : index
    %c0_4 = arith.constant 0 : index
    %c0_5 = arith.constant 0 : index
    %c0_6 = arith.constant 0 : index
    %2 = vector.load %arg2[%c0_3, %c0_4, %c0_5, %c0_6] : memref<1x4x16x8xf32, #tpu.memory_space<vmem>>, vector<1x4x16x8xf32>
    %3 = vector.shape_cast %2 : vector<1x4x16x8xf32> to vector<4x16x8xf32>
    %c0_7 = arith.constant 0 : index
    %c0_8 = arith.constant 0 : index
    %c0_9 = arith.constant 0 : index
    %c0_10 = arith.constant 0 : index
    %4 = vector.load %arg3[%c0_7, %c0_8, %c0_9, %c0_10] : memref<1x4x16x8xf32, #tpu.memory_space<vmem>>, vector<1x4x16x8xf32>
    %5 = vector.shape_cast %4 : vector<1x4x16x8xf32> to vector<4x16x8xf32>
    %c0_11 = arith.constant 0 : index
    %c0_12 = arith.constant 0 : index
    %6 = vector.load %arg4[%c0_11, %c0_12] : memref<8x8xf32, #tpu.memory_space<vmem>>, vector<8x8xf32>
    %c0_13 = arith.constant 0 : index
    %c0_14 = arith.constant 0 : index
    %7 = vector.load %arg6[%c0_13, %c0_14] : memref<8x8xf32, #tpu.memory_space<vmem>>, vector<8x8xf32>
    %c0_15 = arith.constant 0 : index
    %c0_16 = arith.constant 0 : index
    %8 = vector.load %arg8[%c0_15, %c0_16] : memref<8x8xf32, #tpu.memory_space<vmem>>, vector<8x8xf32>
    %c0_17 = arith.constant 0 : index
    %c0_18 = arith.constant 0 : index
    %9 = vector.load %arg5[%c0_17, %c0_18] : memref<1x8xf32, #tpu.memory_space<vmem>>, vector<1x8xf32>
    %c0_19 = arith.constant 0 : index
    %c0_20 = arith.constant 0 : index
    %10 = vector.load %arg7[%c0_19, %c0_20] : memref<1x8xf32, #tpu.memory_space<vmem>>, vector<1x8xf32>
    %c0_21 = arith.constant 0 : index
    %c0_22 = arith.constant 0 : index
    %11 = vector.load %arg9[%c0_21, %c0_22] : memref<1x8xf32, #tpu.memory_space<vmem>>, vector<1x8xf32>
    %c0_23 = arith.constant 0 : index
    %c0_24 = arith.constant 0 : index
    %c0_25 = arith.constant 0 : index
    %12 = vector.load %arg10[%c0_23, %c0_24, %c0_25] : memref<4x8x32xf32, #tpu.memory_space<vmem>>, vector<4x8x32xf32>
    %c0_26 = arith.constant 0 : index
    %c0_27 = arith.constant 0 : index
    %13 = vector.load %arg11[%c0_26, %c0_27] : memref<1x32xf32, #tpu.memory_space<vmem>>, vector<1x32xf32>
    %14 = vector.shape_cast %1 : vector<4x16x8xf32> to vector<64x8xf32>
    %cst = arith.constant dense<0.000000e+00> : vector<64x8xf32>
    %15 = tpu.matmul %14, %6, %cst {dimension_numbers = #tpu.dot_dimension_numbers<[1], [0], [0], [1], [0, 0, 1, 1], [], []>} : vector<64x8xf32>, vector<8x8xf32>, vector<64x8xf32> -> vector<64x8xf32>
    %16 = vector.broadcast %9 : vector<1x8xf32> to vector<64x8xf32>
    %17 = arith.addf %15, %16 : vector<64x8xf32>
    %18 = vector.shape_cast %17 : vector<64x8xf32> to vector<4x16x8xf32>
    %19 = vector.shape_cast %3 : vector<4x16x8xf32> to vector<64x8xf32>
    %cst_28 = arith.constant dense<0.000000e+00> : vector<64x8xf32>
    %20 = tpu.matmul %19, %7, %cst_28 {dimension_numbers = #tpu.dot_dimension_numbers<[1], [0], [0], [1], [0, 0, 1, 1], [], []>} : vector<64x8xf32>, vector<8x8xf32>, vector<64x8xf32> -> vector<64x8xf32>
    %21 = vector.broadcast %10 : vector<1x8xf32> to vector<64x8xf32>
    %22 = arith.addf %20, %21 : vector<64x8xf32>
    %23 = vector.shape_cast %22 : vector<64x8xf32> to vector<4x16x8xf32>
    %24 = vector.shape_cast %5 : vector<4x16x8xf32> to vector<64x8xf32>
    %cst_29 = arith.constant dense<0.000000e+00> : vector<64x8xf32>
    %25 = tpu.matmul %24, %8, %cst_29 {dimension_numbers = #tpu.dot_dimension_numbers<[1], [0], [0], [1], [0, 0, 1, 1], [], []>} : vector<64x8xf32>, vector<8x8xf32>, vector<64x8xf32> -> vector<64x8xf32>
    %26 = vector.broadcast %11 : vector<1x8xf32> to vector<64x8xf32>
    %27 = arith.addf %25, %26 : vector<64x8xf32>
    %28 = vector.shape_cast %27 : vector<64x8xf32> to vector<4x16x8xf32>
    "tpu.trace_start"() <{level = 10 : i32, message = "hqd,hkd->hqk"}> : () -> ()
    %cst_30 = arith.constant dense<0.000000e+00> : vector<4x16x16xf32>
    %29 = tpu.matmul %18, %23, %cst_30 {dimension_numbers = #tpu.dot_dimension_numbers<[2], [2], [1], [1], [0, 0, 0, 1, 1, 1], [0], [0]>} : vector<4x16x8xf32>, vector<4x16x8xf32>, vector<4x16x16xf32> -> vector<4x16x16xf32>
    "tpu.trace_stop"() : () -> ()
    %cst_31 = arith.constant 0.353553385 : f32
    %30 = vector.broadcast %cst_31 : f32 to vector<4x16x16xf32>
    %31 = arith.mulf %29, %30 : vector<4x16x16xf32>
    %cst_32 = arith.constant dense<0xFF800000> : vector<4x16xf32>
    %32 = vector.multi_reduction <maximumf>, %31, %cst_32 [2] : vector<4x16x16xf32> to vector<4x16xf32>
    %33 = vector.shape_cast %32 : vector<4x16xf32> to vector<4x16x1xf32>
    %34 = vector.broadcast %33 : vector<4x16x1xf32> to vector<4x16x16xf32>
    %35 = arith.subf %31, %34 : vector<4x16x16xf32>
    %36 = math.exp %35 : vector<4x16x16xf32>
    %cst_33 = arith.constant dense<0.000000e+00> : vector<4x16xf32>
    %37 = vector.multi_reduction <add>, %36, %cst_33 [2] : vector<4x16x16xf32> to vector<4x16xf32>
    %38 = vector.shape_cast %37 : vector<4x16xf32> to vector<4x16x1xf32>
    %39 = tpu.reciprocal %38 {approx = true} : vector<4x16x1xf32> -> vector<4x16x1xf32>
    %40 = vector.broadcast %39 : vector<4x16x1xf32> to vector<4x16x16xf32>
    %41 = arith.mulf %36, %40 : vector<4x16x16xf32>
    %c0_34 = arith.constant 0 : index
    %c0_35 = arith.constant 0 : index
    %c0_36 = arith.constant 0 : index
    %c0_37 = arith.constant 0 : index
    %42 = vector.load %arg12[%c0_34, %c0_35, %c0_36, %c0_37] : memref<1x4x16x16xf32, #tpu.memory_space<vmem>>, vector<1x4x16x16xf32>
    %43 = vector.shape_cast %42 : vector<1x4x16x16xf32> to vector<4x16x16xf32>
    %44 = vector.shape_cast %41 : vector<4x16x16xf32> to vector<1x4x16x16xf32>
    tpu.vector_store %arg12[%c0_34, %c0_35, %c0_36, %c0_37], %44 {strides = array<i32>} : memref<1x4x16x16xf32, #tpu.memory_space<vmem>>, vector<1x4x16x16xf32>,
    "tpu.trace_start"() <{level = 10 : i32, message = "hqk,hkd->hqd"}> : () -> ()
    %cst_38 = arith.constant dense<0.000000e+00> : vector<4x16x8xf32>
    %45 = tpu.matmul %41, %28, %cst_38 {dimension_numbers = #tpu.dot_dimension_numbers<[2], [1], [1], [2], [0, 0, 0, 1, 1, 2], [0], [0]>} : vector<4x16x16xf32>, vector<4x16x8xf32>, vector<4x16x8xf32> -> vector<4x16x8xf32>
    "tpu.trace_stop"() : () -> ()
    "tpu.trace_start"() <{level = 10 : i32, message = "hsd,hdc->hsc"}> : () -> ()
    %cst_39 = arith.constant dense<0.000000e+00> : vector<4x16x32xf32>
    %46 = tpu.matmul %45, %12, %cst_39 {dimension_numbers = #tpu.dot_dimension_numbers<[2], [1], [1], [2], [0, 0, 0, 1, 1, 2], [0], [0]>} : vector<4x16x8xf32>, vector<4x8x32xf32>, vector<4x16x32xf32> -> vector<4x16x32xf32>
    "tpu.trace_stop"() : () -> ()
    %cst_40 = arith.constant dense<0.000000e+00> : vector<16x32xf32>
    %47 = vector.multi_reduction <add>, %46, %cst_40 [0] : vector<4x16x32xf32> to vector<16x32xf32>
    %48 = vector.broadcast %13 : vector<1x32xf32> to vector<16x32xf32>
    %49 = arith.addf %47, %48 : vector<16x32xf32>
    %c0_41 = arith.constant 0 : index
    %c0_42 = arith.constant 0 : index
    %c0_43 = arith.constant 0 : index
    %50 = vector.load %arg13[%c0_41, %c0_42, %c0_43] : memref<1x16x32xf32, #tpu.memory_space<vmem>>, vector<1x16x32xf32>
    %51 = vector.shape_cast %50 : vector<1x16x32xf32> to vector<16x32xf32>
    %52 = vector.shape_cast %49 : vector<16x32xf32> to vector<1x16x32xf32>
    tpu.vector_store %arg13[%c0_41, %c0_42, %c0_43], %52 {strides = array<i32>} : memref<1x16x32xf32, #tpu.memory_space<vmem>>, vector<1x16x32xf32>,
    return
  }
  func.func @transform_0(%arg0: i32) -> (i32, i32, i32, i32) {
    %c0_i32 = arith.constant 0 : i32
    %c0_i32_0 = arith.constant 0 : i32
    %c0_i32_1 = arith.constant 0 : i32
    %c0_i32_2 = arith.constant 0 : i32
    return %arg0, %c0_i32, %c0_i32_0, %c0_i32_1 : i32, i32, i32, i32
  }
  func.func @transform_1(%arg0: i32) -> (i32, i32, i32, i32) {
    %c0_i32 = arith.constant 0 : i32
    %c0_i32_0 = arith.constant 0 : i32
    %c0_i32_1 = arith.constant 0 : i32
    %c0_i32_2 = arith.constant 0 : i32
    return %arg0, %c0_i32, %c0_i32_0, %c0_i32_1 : i32, i32, i32, i32
  }
  func.func @transform_2(%arg0: i32) -> (i32, i32, i32, i32) {
    %c0_i32 = arith.constant 0 : i32
    %c0_i32_0 = arith.constant 0 : i32
    %c0_i32_1 = arith.constant 0 : i32
    %c0_i32_2 = arith.constant 0 : i32
    return %arg0, %c0_i32, %c0_i32_0, %c0_i32_1 : i32, i32, i32, i32
  }
  func.func @transform_3(%arg0: i32) -> (i32, i32) {
    %c0_i32 = arith.constant 0 : i32
    %c0_i32_0 = arith.constant 0 : i32
    %c0_i32_1 = arith.constant 0 : i32
    return %c0_i32, %c0_i32_0 : i32, i32
  }
  func.func @transform_4(%arg0: i32) -> (i32, i32) {
    %c0_i32 = arith.constant 0 : i32
    %c0_i32_0 = arith.constant 0 : i32
    %c0_i32_1 = arith.constant 0 : i32
    return %c0_i32, %c0_i32_0 : i32, i32
  }
  func.func @transform_5(%arg0: i32) -> (i32, i32) {
    %c0_i32 = arith.constant 0 : i32
    %c0_i32_0 = arith.constant 0 : i32
    %c0_i32_1 = arith.constant 0 : i32
    return %c0_i32, %c0_i32_0 : i32, i32
  }
  func.func @transform_6(%arg0: i32) -> (i32, i32) {
    %c0_i32 = arith.constant 0 : i32
    %c0_i32_0 = arith.constant 0 : i32
    %c0_i32_1 = arith.constant 0 : i32
    return %c0_i32, %c0_i32_0 : i32, i32
  }
  func.func @transform_7(%arg0: i32) -> (i32, i32) {
    %c0_i32 = arith.constant 0 : i32
    %c0_i32_0 = arith.constant 0 : i32
    %c0_i32_1 = arith.constant 0 : i32
    return %c0_i32, %c0_i32_0 : i32, i32
  }
  func.func @transform_8(%arg0: i32) -> (i32, i32) {
    %c0_i32 = arith.constant 0 : i32
    %c0_i32_0 = arith.constant 0 : i32
    %c0_i32_1 = arith.constant 0 : i32
    return %c0_i32, %c0_i32_0 : i32, i32
  }
  func.func @transform_9(%arg0: i32) -> (i32, i32, i32) {
    %c0_i32 = arith.constant 0 : i32
    %c0_i32_0 = arith.constant 0 : i32
    %c0_i32_1 = arith.constant 0 : i32
    %c0_i32_2 = arith.constant 0 : i32
    return %c0_i32, %c0_i32_0, %c0_i32_1 : i32, i32, i32
  }
  func.func @transform_10(%arg0: i32) -> (i32, i32) {
    %c0_i32 = arith.constant 0 : i32
    %c0_i32_0 = arith.constant 0 : i32
    %c0_i32_1 = arith.constant 0 : i32
    return %c0_i32, %c0_i32_0 : i32, i32
  }
  func.func @transform_11(%arg0: i32) -> (i32, i32, i32, i32) {
    %c0_i32 = arith.constant 0 : i32
    %c0_i32_0 = arith.constant 0 : i32
    %c0_i32_1 = arith.constant 0 : i32
    %c0_i32_2 = arith.constant 0 : i32
    return %arg0, %c0_i32, %c0_i32_0, %c0_i32_1 : i32, i32, i32, i32
  }
  func.func @transform_12(%arg0: i32) -> (i32, i32, i32) {
    %c0_i32 = arith.constant 0 : i32
    %c0_i32_0 = arith.constant 0 : i32
    %c0_i32_1 = arith.constant 0 : i32
    return %arg0, %c0_i32, %c0_i32_0 : i32, i32, i32
  }
}

</mosaic_0001>

<bundles_post_ra>
// kernel: tpu_custom_call.1
= control target key start
LH: loop header
LB: loop body
LE: loop exit
PB: predicated region body
PF: predicated region fallthrough
CT: control target
= control target key end

     0   :  { %s3052_s0 = inlined_call_operand.vmem [shape: f32[2,4,16,8], index: 0, kind: input, shape index: {}]   ;;  %s3053_s1 = inlined_call_operand.vmem [shape: f32[2,4,16,8], index: 1, kind: input, shape index: {}]   ;;  %s3054_s2 = inlined_call_operand.vmem [shape: f32[2,4,16,8], index: 2, kind: input, shape index: {}]   ;;  %s3055_s3 = inlined_call_operand.vmem [shape: f32[8,8], index: 3, kind: input, shape index: {}]   ;;  %s3056_s4 = inlined_call_operand.vmem [shape: f32[1,8], index: 4, kind: input, shape index: {}]   ;;  %s3057_s5 = inlined_call_operand.vmem [shape: f32[8,8], index: 5, kind: input, shape index: {}]   ;;  %s3058_s6 = inlined_call_operand.vmem [shape: f32[1,8], index: 6, kind: input, shape index: {}]   ;;  %s3059_s7 = inlined_call_operand.vmem [shape: f32[8,8], index: 7, kind: input, shape index: {}]   ;;  %s3060_s8 = inlined_call_operand.vmem [shape: f32[1,8], index: 8, kind: input, shape index: {}]   ;;  %s3061_s9 = inlined_call_operand.vmem [shape: f32[4,8,32], index: 9, kind: input, shape index: {}]   ;;  %s3062_s10 = inlined_call_operand.vmem [shape: f32[1,32], index: 10, kind: input, shape index: {}]   ;;  %s3063_s11 = inlined_call_operand.hbm [shape: f32[2,4,16,16], index: 11, kind: output, shape index: {0}]   ;;  %s3064_s12 = inlined_call_operand.hbm [shape: f32[2,16,32], index: 12, kind: output, shape index: {1}]  }
   0x1   :  { %3066 = sst [smem:[#allocation8_spill]] %s3052_s0 }
   0x2   :  { %3067 = sst [smem:[#allocation9_spill]] %s3057_s5 }
   0x3   :  { %18 = vsyncpa [#allocation3], 0 }
   0x4   :  { %20 = vsyncpa [#allocation3 + $0x1], 0 }
   0x5   :  { %21 = vsyncpa [#allocation5], 0 }
   0x6   :  { %23 = vsyncpa [#allocation5 + $0x1], 0  ;;  %s2740_s21 = smov 0   ;;  %s2742_s22 = smov 0  }
   0x7   :  { %s2744_s23 = smov 0   ;;  %s2746_s24 = smov 0  }
   0x8 LB: > { %s2761_s25 = sadd.s32 4294967295, %s2669_s24   ;;  %s2183_s26 = sadd.s32 4294967294, %s2669_s24   ;;  %s2669_s24 = sphi %s2746_s24, %s3080_s24   ;;  %s2665_s23 = sphi %s2744_s23, %s3079_s23   ;;  %s2661_s22 = sphi %s2742_s22, %s3078_s22   ;;  %s2657_s21 = sphi %s2740_s21, %s3077_s21  }
   0x9   : > { %s2765_s27 = sadd.s32 1, %s2669_s24   ;;  %s282_s28 = sadd.s32 1, %s2665_s23 }
   0xa   : > { %s279_s29 = ssub.s32 %s2669_s24, %s2765_s27  ;;  %p292_p0 = scmp.ne.s32.totalorder %s2665_s23, %s2661_s22 }
   0xb   : > { %p280_p1 = scmp.eq.s32.totalorder %s279_s29, 0  ;;  %p293_p2 = scmp.eq.s32.totalorder %s2761_s25, 1 }
   0xc   : > { %p298_p3 = scmp.ne.s32.totalorder %s2661_s22, %s2657_s21  ;;  %p299_p4 = scmp.eq.s32.totalorder %s2183_s26, 1 }
   0xd   : > { %s2776_s30 = scalar_select %p280_p1, %s2665_s23, %s282_s28  }
   0xe   : > { %p2778_p5 = por %p293_p2, %p292_p0  ;;  %p2782_p6 = por %p299_p4, %p298_p3 }
   0xf   : > { %p2186_p7 = scmp.ge.s32.totalorder %s2669_s24, 1  ;;  %p391_p8 = scmp.lt.s32.totalorder %s2669_s24, 3 }
  0x11   : > { %p392_p9 = pnand %p2186_p7, %p391_p8 }
  0x12   : > { %s3070_s5 = sld [smem:[#allocation9_spill]] (!%p392_p9)  ;;  %p448_p10 = scmp.lt.s32.totalorder (!%p392_p9), %s2761_s25, 1  ;;  %v487_v1 = vld [vmem:[%s3055_s3] sm:$0xff] (!%p392_p9)  ;;  %vm504_vm0 = vcmask (!%p392_p9), 64512   ;;  %vm1260_vm2 = vcmask (!%p392_p9), 130048  }
  0x13   : > { %395 = sbr.rel (%p392_p9) target bundleno = 1254 (0x4e6), region = 64  ;;  %2339 = vmatprep.subr.mxu0 (!%p392_p9), %v487_v1  ;;  %s3071_s0 = sld [smem:[#allocation8_spill]] (!%p392_p9)  ;;  %v489_v18 = vld [vmem:[%s3059_s7] sm:$0xff] (!%p392_p9)  ;;  %vm2845_vm1 = vmpackc.low (!%p392_p9), %vm504_vm0, %vm504_vm0 }
  0x14   : > { %2340 = vmatpush3.msra.mxu0 (!%p392_p9), %v487_v1  ;;  %v2204_v27 = vld [vmem:[%s3058_s6] ss:$0 sm:$0xff] (!%p392_p9)  ;;  %s2899_s18 = sand.u32 (!%p392_p9), 1, %s2661_s22  }
  0x15   : > { %2367 = vmatprep.subr.mxu0 (!%p392_p9), %v489_v18  ;;  %v2195_v29 = vld [vmem:[%s3056_s4] ss:$0 sm:$0xff] (!%p392_p9) }
  0x18   : > { %v488_v0 = vld [vmem:[%s3070_s5] sm:$0xff] (!%p392_p9) }
  0x19   : > { %2353 = vmatprep.subr.mxu1 (!%p392_p9), %v488_v0 }
  0x1a   : > { %2354 = vmatpush3.msra.mxu1 %v488_v0  ;;  %s449_s19 = scalar_select %p448_p10, %s2761_s25, 1 }
  0x1c   : > { %s2796_s20 = sshll.u32 %s449_s19, 6  ;;  %s2187_s19 = sshll.u32 %s2899_s18, 6 }
  0x1d   : > { %s457_s29 = scalar_lea.vmem %s3053_s1, %s2796_s20  ;;  %s452_s5 = scalar_lea.vmem %s3071_s0, %s2796_s20 }
  0x1e   : > { %v471_v2 = vld [vmem:[%s457_s29] sm:$0xff]  ;;  %v472_v3 = vld [vmem:[%s457_s29 + $0x8] sm:$0xff]  ;;  %v473_v4 = vld [vmem:[%s457_s29 + $0x10] sm:$0xff]  ;;  %s462_s28 = scalar_lea.vmem %s3054_s2, %s2796_s20  ;;  %s2902_s26 = scalar_lea.vmem [#allocation2], %s2187_s19 }
  0x1f   : > { %2355 = vmatprep.mubr.msk.f32.mxu1 %vm504_vm0, %v471_v2  ;;  %v463_v5 = vld [vmem:[%s452_s5] sm:$0xff]  ;;  %v464_v6 = vld [vmem:[%s452_s5 + $0x8] sm:$0xff]  ;;  %v465_v7 = vld [vmem:[%s452_s5 + $0x10] sm:$0xff]  ;;  %s2671_s19 = smov [#allocation2]  }
  0x20   : > { %2356 = vmatmul.mubr.msk.f32.vlgmr.msra.gmra.mrb[0].mxu1 %vm504_vm0, %v472_v3  ;;  %2341 = vmatprep.mubr.msk.f32.mxu0 %vm504_vm0, %v463_v5  ;;  %v474_v8 = vld [vmem:[%s457_s29 + $0x18] sm:$0xff]  ;;  %v475_v9 = vld [vmem:[%s457_s29 + $0x20] sm:$0xff]  ;;  %v476_v12 = vld [vmem:[%s457_s29 + $0x28] sm:$0xff]  ;;  %s2579_s0 = sshll.u32 %s2671_s19, 4  ;;  %s2580_s0 = int_to_ptr.vmem [resolvable:$false] %s2579_s0 }
  0x21   : > { %2358 = vmatprep.mubr.msk.f32.mxu1 %vm504_vm0, %v473_v4  ;;  %2342 = vmatmul.mubr.msk.f32.vlgmr.msra.gmra.mrb[0].mxu0 %vm504_vm0, %v464_v6  ;;  %v466_v10 = vld [vmem:[%s452_s5 + $0x18] sm:$0xff]  ;;  %v467_v11 = vld [vmem:[%s452_s5 + $0x20] sm:$0xff]  ;;  %v477_v13 = vld [vmem:[%s457_s29 + $0x30] sm:$0xff] }
  0x22   : > { %2344 = vmatprep.mubr.msk.f32.mxu0 %vm504_vm0, %v465_v7  ;;  %v468_v14 = vld [vmem:[%s452_s5 + $0x28] sm:$0xff]  ;;  %v469_v15 = vld [vmem:[%s452_s5 + $0x30] sm:$0xff]  ;;  %v478_v16 = vld [vmem:[%s457_s29 + $0x38] sm:$0xff]  ;;  %2368 = vmatpush3.msra.mxu0 %v489_v18 }
  0x23   : > { %v470_v17 = vld [vmem:[%s452_s5 + $0x38] sm:$0xff]  ;;  %v479_v19 = vld [vmem:[%s462_s28] sm:$0xff]  ;;  %v480_v20 = vld [vmem:[%s462_s28 + $0x8] sm:$0xff]  ;;  %s2049_s5 = sshll.u32 %s2902_s26, 4  ;;  %s2957_s5 = int_to_ptr.vmem [resolvable:$true] %s2049_s5 }
  0x24   : > { %2359 = vmatmul.mubr.msk.f32.gmra.mrb[2].mxu1 %vm504_vm0, %v474_v8  ;;  %v481_v21 = vld [vmem:[%s462_s28 + $0x10] sm:$0xff]  ;;  %v482_v22 = vld [vmem:[%s462_s28 + $0x18] sm:$0xff]  ;;  %v483_v23 = vld [vmem:[%s462_s28 + $0x20] sm:$0xff]  ;;  %s2575_s17 = scalar_lea.vmem %s2957_s5, 1024  ;;  %p2582_p0 = scmp.lt.s32.totalorder %s2957_s5, %s2580_s0 }
  0x25   : > { %2361 = vmatprep.mubr.msk.f32.mxu1 %vm504_vm0, %v475_v9  ;;  %2345 = vmatmul.mubr.msk.f32.gmra.mrb[2].mxu0 %vm504_vm0, %v466_v10  ;;  %v484_v24 = vld [vmem:[%s462_s28 + $0x28] sm:$0xff]  ;;  %v485_v25 = vld [vmem:[%s462_s28 + $0x30] sm:$0xff]  ;;  %v486_v26 = vld [vmem:[%s462_s28 + $0x38] sm:$0xff]  ;;  %s2266_s28 = sshll.u32 %s2761_s25, 10  ;;  %p2576_p11 = scmp.ne.s32.totalorder %s2957_s5, %s2575_s17 }
  0x26   : > { %2347 = vmatprep.mubr.msk.f32.mxu0 %vm504_vm0, %v467_v11  ;;  %v2213_v3 = vld [vmem:[%s3060_s8] ss:$0 sm:$0xff]  ;;  %s2955_s15 = scalar_lea.hbm %s3063_s11, %s2266_s28 }
  0x27   : > { %p2577_p12 = pnand %p2576_p11, %p2778_p5 }
  0x28   : > { %2362 = vmatmul.mubr.msk.f32.gmra.mrb[4].mxu1 %vm504_vm0, %v476_v12 }
  0x29   : > { %2364 = vmatprep.mubr.msk.f32.mxu1 %vm504_vm0, %v477_v13  ;;  %2348 = vmatmul.mubr.msk.f32.gmra.mrb[4].mxu0 %vm504_vm0, %v468_v14  ;;  %p2578_p13 = pneg %p2577_p12 }
  0x2a   : > { %2350 = vmatprep.mubr.msk.f32.mxu0 %vm504_vm0, %v469_v15 }
  0x2c   : > { %2365 = vmatmul.mubr.msk.f32.gmra.mrb[6].mxu1 %vm504_vm0, %v478_v16 }
  0x2d   : > { %2351 = vmatmul.mubr.msk.f32.gmra.mrb[6].mxu0 %vm504_vm0, %v470_v17 }
  0x2e   : > { %2369 = vmatprep.mubr.msk.f32.mxu0 %vm504_vm0, %v479_v19 }
  0x31   : > { %2370 = vmatmul.mubr.msk.f32.vlgmr.msra.gmra.mrb[8].mxu0 %vm504_vm0, %v480_v20 }
  0x32   : > { %2372 = vmatprep.mubr.msk.f32.mxu0 %vm504_vm0, %v481_v21 }
  0x35   : > { %2373 = vmatmul.mubr.msk.f32.gmra.mrb[10].mxu0 %vm504_vm0, %v482_v22 }
  0x36   : > { %2375 = vmatprep.mubr.msk.f32.mxu0 %vm504_vm0, %v483_v23 }
  0x39   : > { %2376 = vmatmul.mubr.msk.f32.gmra.mrb[12].mxu0 %vm504_vm0, %v484_v24 }
  0x3a   : > { %2378 = vmatprep.mubr.msk.f32.mxu0 %vm504_vm0, %v485_v25 }
  0x3d   : > { %2379 = vmatmul.mubr.msk.f32.gmra.mrb[14].mxu0 %vm504_vm0, %v486_v26 }
  0xf3   : > { %v2357_v28 = vpop.f32.mrb[0].mxu1 }
  0xf4   : > { %v736_v30 = vadd.f32 %v2357_v28, %v2204_v27  ;;  %v730_v31 = vpop.f32.mrb[1].mxu1  ;;  %v2343_v32 = vpop.f32.mrb[0].mxu0 }
  0xf5   : > { %v731_v33 = vadd.f32 %v2204_v27, %v730_v31  ;;  %v595_v34 = vpop.f32.mrb[1].mxu0  ;;  %v601_v49 = vadd.f32 %v2343_v32, %v2195_v29 }
  0xf6   : > { %v596_v36 = vadd.f32 %v2195_v29, %v595_v34 }
  0xf7   : > { %v2457_v37 = vpack.c.bf16 %v736_v30, %v731_v33  ;;  %v2360_v38 = vpop.f32.mrb[2].mxu1 }
  0xf8   : > { %v746_v39 = vadd.f32 %v2360_v38, %v2204_v27  ;;  %v740_v40 = vpop.f32.mrb[3].mxu1  ;;  %2385 = vmatprep.mubr.msk.f32.mxu1 %vm504_vm0, %v596_v36  ;;  %v2346_v41 = vpop.f32.mrb[2].mxu0 }
  0xf9   : > { %2459 = vmatprep.subr.msk.bf16.mxu1 %vm2845_vm1, %v2457_v37  ;;  %v741_v42 = vadd.f32 %v2204_v27, %v740_v40  ;;  %v605_v43 = vpop.f32.mrb[3].mxu0  ;;  %v611_v0 = vadd.f32 %v2346_v41, %v2195_v29 }
  0xfa   : > { %2462 = vmatpush3.bf16.xpose.msk.msra.mxu1 %vm2845_vm1, %v2457_v37  ;;  %v606_v54 = vadd.f32 %v2195_v29, %v605_v43 }
  0xfb   : > { %v2463_v44 = vpack.c.bf16 %v746_v39, %v741_v42  ;;  %v2363_v45 = vpop.f32.mrb[4].mxu1 }
  0xfc   : > { %v756_v46 = vadd.f32 %v2363_v45, %v2204_v27  ;;  %v750_v47 = vpop.f32.mrb[5].mxu1  ;;  %v2349_v48 = vpop.f32.mrb[4].mxu0 }
  0xfd   : > { %v751_v50 = vadd.f32 %v2204_v27, %v750_v47  ;;  %2465 = vmatprep.subr.msk.bf16.mxu1 %vm2845_vm1, %v2463_v44  ;;  %v615_v51 = vpop.f32.mrb[5].mxu0  ;;  %v621_v62 = vadd.f32 %v2349_v48, %v2195_v29 }
  0xfe   : > { %v616_v52 = vadd.f32 %v2195_v29, %v615_v51 }
  0xff   : > { %v2469_v53 = vpack.c.bf16 %v756_v46, %v751_v50  ;;  %v2366_v55 = vpop.f32.mrb[6].mxu1 }
 0x100   : > { %v766_v56 = vadd.f32 %v2366_v55, %v2204_v27  ;;  %v760_v57 = vpop.f32.mrb[7].mxu1  ;;  %2399 = vmatprep.mubr.msk.f32.mxu0 %vm504_vm0, %v616_v52  ;;  %v2352_v58 = vpop.f32.mrb[6].mxu0 }
 0x101   : > { %2386 = vmatmul.mubr.msk.f32.vlgmr.msra.gmra.mrb[8].mxu1 %vm504_vm0, %v601_v49  ;;  %2471 = vmatprep.subr.msk.bf16.mxu0 %vm2845_vm1, %v2469_v53  ;;  %v761_v59 = vadd.f32 %v2204_v27, %v760_v57  ;;  %v625_v60 = vpop.f32.mrb[7].mxu0  ;;  %v631_v1 = vadd.f32 %v2352_v58, %v2195_v29 }
 0x102   : > { %2468 = vmatpush3.bf16.xpose.msk.msra.mxu1 %vm2845_vm1, %v2463_v44  ;;  %2474 = vmatpush3.bf16.xpose.msk.msra.mxu0 %vm2845_vm1, %v2469_v53  ;;  %v626_v63 = vadd.f32 %v2195_v29, %v625_v60 }
 0x103   : > { %v2475_v61 = vpack.c.bf16 %v766_v56, %v761_v59  ;;  %2392 = vmatprep.mubr.msk.f32.mxu1 %vm504_vm0, %v606_v54 }
 0x104   : > { %v2371_v2 = vpop.f32.mrb[8].mxu0 }
 0x105   : > { %2477 = vmatprep.subr.msk.bf16.mxu1 %vm2845_vm1, %v2475_v61  ;;  %v871_v4 = vadd.f32 %v2371_v2, %v2213_v3  ;;  %v865_v5 = vpop.f32.mrb[9].mxu0 }
 0x106   : > { %v866_v6 = vadd.f32 %v2213_v3, %v865_v5 }
 0x108   : > { %v2481_v7 = vpack.c.bf16 %v871_v4, %v866_v6  ;;  %v2374_v8 = vpop.f32.mrb[10].mxu0 }
 0x109   : > { %2393 = vmatmul.mubr.msk.f32.vlgmr.msra.gmra.mrb[10].mxu1 %vm504_vm0, %v611_v0  ;;  %2400 = vmatmul.mubr.msk.f32.vlgmr.msra.gmra.mrb[16].mxu0 %vm504_vm0, %v621_v62  ;;  %v881_v9 = vadd.f32 %v2374_v8, %v2213_v3  ;;  %v875_v10 = vpop.f32.mrb[11].mxu0 }
 0x10a   : > { %2480 = vmatpush3.bf16.xpose.msk.msra.mxu1 %vm2845_vm1, %v2475_v61  ;;  %2406 = vmatprep.mubr.msk.f32.mxu1 %vm504_vm0, %v626_v63  ;;  %v876_v11 = vadd.f32 %v2213_v3, %v875_v10 }
 0x10b   : > { %2482 = vmatprep.subr.bf16.mxu0 %v2481_v7 }
 0x10c   : > { %v2377_v12 = vpop.f32.mrb[12].mxu0  ;;  %2484 = vmatpush3.bf16.msra.mxu0 %v2481_v7  ;;  %v2485_v15 = vpack.c.bf16 %v881_v9, %v876_v11 }
 0x10d   : > { %v891_v13 = vadd.f32 %v2377_v12, %v2213_v3  ;;  %v885_v14 = vpop.f32.mrb[13].mxu0 }
 0x10e   : > { %v886_v16 = vadd.f32 %v2213_v3, %v885_v14  ;;  %2486 = vmatprep.subr.bf16.mxu1 %v2485_v15 }
 0x110   : > { %v2380_v17 = vpop.f32.mrb[14].mxu0  ;;  %v2876_v20 = vpack.c.bf16 %v891_v13, %v886_v16 }
 0x111   : > { %2407 = vmatmul.mubr.msk.f32.vlgmr.msra.gmra.mrb[12].mxu1 %vm504_vm0, %v631_v1  ;;  %v901_v18 = vadd.f32 %v2380_v17, %v2213_v3  ;;  %v895_v19 = vpop.f32.mrb[15].mxu0 }
 0x112   : > { %v896_v21 = vadd.f32 %v2213_v3, %v895_v19  ;;  %2488 = vmatpush3.bf16.msra.mxu1 %v2485_v15  ;;  %2490 = vmatprep.subr.bf16.mxu0 %v2876_v20 }
 0x114   : > { %v2878_v22 = vpack.c.bf16 %v901_v18, %v896_v21 }
 0x116   : > { %2494 = vmatprep.subr.bf16.mxu1 %v2878_v22 }
 0x1d4   : > { %v2387_v23 = vpop.f32.mrb[8].mxu1 }
 0x1d5   : > { %v1253_v24 = vmul.f32 0.35355338, %v2387_v23  ;;  %v982_v25 = vpop.f32.mrb[9].mxu1 }
 0x1d6   : > { %v1252_v27 = vmul.f32 0.35355338, %v982_v25 }
 0x1d7   : > { %v1264_v26 = vsel %vm1260_vm2, %v1253_v24, -inf }
 0x1d8   : > { %1265 = vmax.xlane.f32.xlu0 %v1264_v26  ;;  %v1261_v28 = vsel %vm1260_vm2, %v1252_v27, -inf }
 0x1dc   : > { %v2401_v29 = vpop.f32.mrb[16].mxu0  ;;  %1262 = vmax.xlane.f32.xlu0 %v1261_v28  ;;  %v2394_v30 = vpop.f32.mrb[10].mxu1 }
 0x1dd   : > { %v1255_v31 = vmul.f32 0.35355338, %v2394_v30  ;;  %v1156_v32 = vpop.f32.mrb[17].mxu0  ;;  %v1069_v33 = vpop.f32.mrb[11].mxu1  ;;  %v1257_v38 = vmul.f32 0.35355338, %v2401_v29 }
 0x1de   : > { %v1256_v34 = vmul.f32 0.35355338, %v1156_v32  ;;  %v1254_v36 = vmul.f32 0.35355338, %v1069_v33 }
 0x1df   : > { %v1270_v35 = vsel %vm1260_vm2, %v1255_v31, -inf  ;;  %v1276_v44 = vsel %vm1260_vm2, %v1257_v38, -inf }
 0x1e0   : > { %1271 = vmax.xlane.f32.xlu1 %v1270_v35  ;;  %v1273_v37 = vsel %vm1260_vm2, %v1256_v34, -inf  ;;  %v1267_v39 = vsel %vm1260_vm2, %v1254_v36, -inf }
 0x1e1   : > { %1274 = vmax.xlane.f32.xlu0 %v1273_v37 }
 0x1e4   : > { %1268 = vmax.xlane.f32.xlu1 %v1267_v39  ;;  %v2408_v40 = vpop.f32.mrb[12].mxu1 }
 0x1e5   : > { %v1243_v41 = vpop.f32.mrb[13].mxu1  ;;  %v1259_v43 = vmul.f32 0.35355338, %v2408_v40 }
 0x1e6   : > { %v1258_v42 = vmul.f32 0.35355338, %v1243_v41 }
 0x1e7   : > { %v1282_v46 = vsel %vm1260_vm2, %v1259_v43, -inf }
 0x1e8   : > { %1277 = vmax.xlane.f32.xlu1 %v1276_v44  ;;  %v1279_v45 = vsel %vm1260_vm2, %v1258_v42, -inf }
 0x1e9   : > { %1280 = vmax.xlane.f32.xlu0 %v1279_v45 }
 0x1ec   : > { %1283 = vmax.xlane.f32.xlu1 %v1282_v46 }
 0x265   : > { %v1266_v47 = vpop.xlane.xlu0 %1265 }
 0x266   : > { %v1286_v48 = vsub.f32 %v1253_v24, %v1266_v47 }
 0x268   : > { %v1295_v49 = vmul.f32 1.442695, %v1286_v48  ;;  %v494_v48 = vld [vmem:[%s3061_s9 + $0x8] sm:$0xff] }
 0x269   : > { %v1263_v50 = vpop.xlane.xlu0 %1262 }
 0x26a   : > { %2543 = vpow2.f32 %v1295_v49  ;;  %v1285_v51 = vsub.f32 %v1252_v27, %v1263_v50  ;;  %v495_v49 = vld [vmem:[%s3061_s9 + $0x10] sm:$0xff]  ;;  %v496_v50 = vld [vmem:[%s3061_s9 + $0x18] sm:$0xff] }
 0x26c   : > { %v1293_v52 = vmul.f32 1.442695, %v1285_v51 }
 0x26d   : > { %v1272_v53 = vpop.xlane.xlu1 %1271 }
 0x26e   : > { %2545 = vpow2.f32 %v1293_v52  ;;  %v1288_v54 = vsub.f32 %v1255_v31, %v1272_v53  ;;  %v1275_v55 = vpop.xlane.xlu0 %1274 }
 0x26f   : > { %v1289_v57 = vsub.f32 %v1256_v34, %v1275_v55 }
 0x270   : > { %v1299_v56 = vmul.f32 1.442695, %v1288_v54 }
 0x271   : > { %v1269_v58 = vpop.xlane.xlu1 %1268  ;;  %v1301_v61 = vmul.f32 1.442695, %v1289_v57 }
 0x272   : > { %2547 = vpow2.f32 %v1299_v56  ;;  %v1287_v59 = vsub.f32 %v1254_v36, %v1269_v58 }
 0x274   : > { %v2544_v60 = vpop.eup %2543  ;;  %v1297_v62 = vmul.f32 1.442695, %v1287_v59 }
 0x275   : > { %v1278_v63 = vpop.xlane.xlu1 %1277  ;;  %v1312_v0 = vsel %vm1260_vm2, %v2544_v60, 0.0 }
 0x276   : > { %2549 = vpow2.f32 %v1297_v62  ;;  %v1290_v1 = vsub.f32 %v1257_v38, %v1278_v63  ;;  %1313 = vadd.xlane.f32.xlu1 %v1312_v0  ;;  %v1281_v2 = vpop.xlane.xlu0 %1280 }
 0x277   : > { %v1291_v3 = vsub.f32 %v1258_v42, %v1281_v2  ;;  %2551 = vpow2.f32 %v1301_v61 }
 0x278   : > { %v2546_v4 = vpop.eup %2545  ;;  %v1303_v5 = vmul.f32 1.442695, %v1290_v1 }
 0x279   : > { %v1305_v6 = vmul.f32 1.442695, %v1291_v3  ;;  %v1284_v7 = vpop.xlane.xlu1 %1283  ;;  %v1309_v8 = vsel %vm1260_vm2, %v2546_v4, 0.0 }
 0x27a   : > { %2553 = vpow2.f32 %v1303_v5  ;;  %v1292_v9 = vsub.f32 %v1259_v43, %v1284_v7  ;;  %1310 = vadd.xlane.f32.xlu0 %v1309_v8 }
 0x27b   : > { %2555 = vpow2.f32 %v1305_v6 }
 0x27c   : > { %v2548_v10 = vpop.eup %2547  ;;  %v1307_v11 = vmul.f32 1.442695, %v1292_v9 }
 0x27d   : > { %v1318_v12 = vsel %vm1260_vm2, %v2548_v10, 0.0 }
 0x27e   : > { %2557 = vpow2.f32 %v1307_v11  ;;  %1319 = vadd.xlane.f32.xlu1 %v1318_v12 }
 0x280   : > { %v2550_v13 = vpop.eup %2549 }
 0x281   : > { %v1315_v14 = vsel %vm1260_vm2, %v2550_v13, 0.0  ;;  %v2552_v15 = vpop.eup %2551 }
 0x282   : > { %1316 = vadd.xlane.f32.xlu0 %v1315_v14  ;;  %v1321_v18 = vsel %vm1260_vm2, %v2552_v15, 0.0 }
 0x284   : > { %v2554_v16 = vpop.eup %2553 }
 0x285   : > { %v1324_v17 = vsel %vm1260_vm2, %v2554_v16, 0.0  ;;  %v2556_v19 = vpop.eup %2555 }
 0x286   : > { %1325 = vadd.xlane.f32.xlu1 %v1324_v17  ;;  %1322 = vadd.xlane.f32.xlu0 %v1321_v18  ;;  %v1327_v24 = vsel %vm1260_vm2, %v2556_v19, 0.0 }
 0x288   : > { %v2558_v21 = vpop.eup %2557 }
 0x289   : > { %v1330_v23 = vsel %vm1260_vm2, %v2558_v21, 0.0 }
 0x28a   : > { %1331 = vadd.xlane.f32.xlu1 %v1330_v23  ;;  %1328 = vadd.xlane.f32.xlu0 %v1327_v24 }
 0x303   : > { %v1314_v25 = vpop.xlane.xlu1 %1313 }
 0x304   : > { %2559 = vrcp.f32 %v1314_v25 }
 0x307   : > { %v1311_v26 = vpop.xlane.xlu0 %1310 }
 0x308   : > { %2561 = vrcp.f32 %v1311_v26 }
 0x30b   : > { %v1320_v27 = vpop.xlane.xlu1 %1319 }
 0x30c   : > { %2563 = vrcp.f32 %v1320_v27 }
 0x30e   : > { %v2560_v28 = vpop.eup %2559 }
 0x30f   : > { %v1342_v29 = vmul.f32 %v2560_v28, %v2544_v60  ;;  %v1317_v30 = vpop.xlane.xlu0 %1316 }
 0x310   : > { %2565 = vrcp.f32 %v1317_v30 }
 0x311   : > { %1350 = vst.msk [vmem:[%s2902_s26 + $0x8] sm:$0xff] %vm1260_vm2, %v1342_v29 }
 0x312   : > { %v2562_v31 = vpop.eup %2561 }
 0x313   : > { %v1326_v32 = vpop.xlane.xlu1 %1325  ;;  %v1323_v33 = vpop.xlane.xlu0 %1322  ;;  %v1341_v34 = vmul.f32 %v2562_v31, %v2546_v4 }
 0x314   : > { %2567 = vrcp.f32 %v1326_v32 }
 0x315   : > { %2569 = vrcp.f32 %v1323_v33  ;;  %1349 = vst.msk [vmem:[%s2902_s26] sm:$0xff] %vm1260_vm2, %v1341_v34  ;;  %2413 = vmatprep.mubr.msk.f32.mxu0 %vm1260_vm2, %v1341_v34 }
 0x316   : > { %v2564_v35 = vpop.eup %2563  ;;  %2414 = vmatmul.mubr.msk.f32.vlgmr.msra.gmra.mrb[18].mxu0 %vm1260_vm2, %v1342_v29 }
 0x317   : > { %v1344_v36 = vmul.f32 %v2564_v35, %v2548_v10  ;;  %2492 = vmatpush3.bf16.msra.mxu0 %v2876_v20  ;;  %v1332_v37 = vpop.xlane.xlu1 %1331  ;;  %v1329_v38 = vpop.xlane.xlu0 %1328 }
 0x318   : > { %2571 = vrcp.f32 %v1332_v37 }
 0x319   : > { %1352 = vst.msk [vmem:[%s2902_s26 + $0x18] sm:$0xff] %vm1260_vm2, %v1344_v36  ;;  %2573 = vrcp.f32 %v1329_v38 }
 0x31a   : > { %v2566_v39 = vpop.eup %2565 }
 0x31b   : > { %v1343_v40 = vmul.f32 %v2566_v39, %v2550_v13 }
 0x31d   : > { %1351 = vst.msk [vmem:[%s2902_s26 + $0x10] sm:$0xff] %vm1260_vm2, %v1343_v40  ;;  %2420 = vmatprep.mubr.msk.f32.mxu1 %vm1260_vm2, %v1343_v40 }
 0x31e   : > { %v2568_v41 = vpop.eup %2567  ;;  %2421 = vmatmul.mubr.msk.f32.vlgmr.msra.gmra.mrb[14].mxu1 %vm1260_vm2, %v1344_v36 }
 0x31f   : > { %v2570_v20 = vpop.eup %2569  ;;  %v1346_v42 = vmul.f32 %v2568_v41, %v2554_v16  ;;  %2496 = vmatpush3.bf16.msra.mxu1 %v2878_v22  ;;  %v493_v22 = vld [vmem:[%s3061_s9] sm:$0xff] }
 0x320   : > { %v1345_v43 = vmul.f32 %v2570_v20, %v2552_v15  ;;  %2437 = vmatprep.subr.mxu0 %v493_v22  ;;  %2442 = vmatprep.subr.mxu1 %v494_v48 }
 0x321   : > { %1354 = vst.msk [vmem:[%s2902_s26 + $0x28] sm:$0xff] %vm1260_vm2, %v1346_v42 }
 0x322   : > { %v2572_v44 = vpop.eup %2571  ;;  %1353 = vst.msk [vmem:[%s2902_s26 + $0x20] sm:$0xff] %vm1260_vm2, %v1345_v43  ;;  %2427 = vmatprep.mubr.msk.f32.mxu0 %vm1260_vm2, %v1345_v43 }
 0x323   : > { %v2574_v45 = vpop.eup %2573  ;;  %v1348_v46 = vmul.f32 %v2572_v44, %v2558_v21  ;;  %2428 = vmatmul.mubr.msk.f32.vlgmr.msra.gmra.mrb[20].mxu0 %vm1260_vm2, %v1346_v42 }
 0x324   : > { %v1347_v47 = vmul.f32 %v2574_v45, %v2556_v19  ;;  %2438 = vmatpush3.msra.mxu0 %v493_v22 }
 0x325   : > { %1356 = vst.msk [vmem:[%s2902_s26 + $0x38] sm:$0xff] %vm1260_vm2, %v1348_v46  ;;  %2447 = vmatprep.subr.mxu0 %v495_v49 }
 0x326   : > { %1355 = vst.msk [vmem:[%s2902_s26 + $0x30] sm:$0xff] %vm1260_vm2, %v1347_v47  ;;  %2434 = vmatprep.mubr.msk.f32.mxu1 %vm1260_vm2, %v1347_v47  ;;  %s2581_s26 = scalar_lea.vmem %s2580_s0, 2048 }
 0x327   : > { %2435 = vmatmul.mubr.msk.f32.vlgmr.msra.gmra.mrb[16].mxu1 %vm1260_vm2, %v1348_v46  ;;  %p2583_p1 = scmp.lt.s32.totalorder %s2581_s26, %s2575_s17 }
 0x328   : > { %2443 = vmatpush3.msra.mxu1 %v494_v48 }
 0x329   : > { %2452 = vmatprep.subr.mxu1 %v496_v50  ;;  %p2584_p2 = por %p2583_p1, %p2582_p0 }
 0x32b   : > { %p2585_p3 = pnand %p2584_p2, %p2578_p13 }
 0x3e9   : > { %v2415_v51 = vpop.f32.mrb[18].mxu0 }
 0x3ea   : > { %v1429_v52 = vpop.f32.mrb[19].mxu0 }
 0x3eb   : > { %2439 = vmatprep.mubr.msk.f32.mxu0 %vm504_vm0, %v1429_v52 }
 0x3ec   : > { %2440 = vmatmul.mubr.msk.f32.vlgmr.msra.gmra.mrb[22].mxu0 %vm504_vm0, %v2415_v51 }
 0x3ed   : > { %2448 = vmatpush3.msra.mxu0 %v495_v49 }
 0x3f1   : > { %v2422_v53 = vpop.f32.mrb[14].mxu1 }
 0x3f2   : > { %v1510_v54 = vpop.f32.mrb[15].mxu1 }
 0x3f3   : > { %2444 = vmatprep.mubr.msk.f32.mxu1 %vm504_vm0, %v1510_v54 }
 0x3f4   : > { %2445 = vmatmul.mubr.msk.f32.vlgmr.msra.gmra.mrb[18].mxu1 %vm504_vm0, %v2422_v53 }
 0x3f5   : > { %2453 = vmatpush3.msra.mxu1 %v496_v50 }
 0x3f6   : > { %v2429_v55 = vpop.f32.mrb[20].mxu0 }
 0x3f7   : > { %v1591_v56 = vpop.f32.mrb[21].mxu0 }
 0x3f8   : > { %2449 = vmatprep.mubr.msk.f32.mxu0 %vm504_vm0, %v1591_v56 }
 0x3f9   : > { %2450 = vmatmul.mubr.msk.f32.vlgmr.msra.gmra.mrb[24].mxu0 %vm504_vm0, %v2429_v55 }
 0x3fa   : > { %v2436_v57 = vpop.f32.mrb[16].mxu1 }
 0x3fb   : > { %v1672_v58 = vpop.f32.mrb[17].mxu1 }
 0x3fc   : > { %2454 = vmatprep.mubr.msk.f32.mxu1 %vm504_vm0, %v1672_v58 }
 0x3fd   : > { %2455 = vmatmul.mubr.msk.f32.vlgmr.msra.gmra.mrb[20].mxu1 %vm504_vm0, %v2436_v57 }
 0x3fe   : > { %2588 = shalt.err (!%p2585_p3)
}
 0x3ff   : > { %s2589_s28 = scalar_lea.hbm %s2955_s15, 1024  ;;  %s2593_s19 = scalar_lea.hbm %s3063_s11, 2048 }
 0x400   : > { %p2590_p4 = scmp.ne.s32.totalorder %s2955_s15, %s2589_s28  ;;  %p2594_p9 = scmp.lt.u32.totalorder %s2955_s15, %s3063_s11 }
 0x401   : > { %p2595_p10 = scmp.lt.u32.totalorder %s2593_s19, %s2589_s28  ;;  %p2597_p12 = scmp.lt.u32.totalorder %s2589_s28, %s2955_s15 }
 0x402   : > { %p2591_p7 = pnand %p2590_p4, %p2778_p5 }
 0x403   : > { %p2596_p11 = por %p2595_p10, %p2594_p9 }
 0x404   : > { %p2592_p8 = pneg %p2591_p7 }
 0x405   : > { %p2598_p13 = por %p2597_p12, %p2596_p11 }
 0x407   : > { %p2599_p0 = pnand %p2598_p13, %p2592_p8 }
 0x409   : > { %2602 = shalt.err (!%p2599_p0)
}
 0x40a   : > { %s3065_s17 = smov 128   ;;  %s2673_s26 = smov 8   ;;  %vm2005_vm3 = vcmask 261120   ;;  %v2254_v12 = vld [vmem:[%s3062_s10] ss:$0 sm:$0xff] }
 0x40b   : > { %s3074_s20 = scalar_lea.sflag [#allocation3], %s2899_s18  ;;  %s2188_s16 = sshll.u32 %s2899_s18, 4 }
 0x40c   : > { %2497 = dma.vmem_to_hbm [thread:$0]  (%p2778_p5), %s2957_s5, 1024, %s2955_s15, %s3074_s20, %s3065_s17, %s3065_s17, %s2673_s26  }
 0x40d   : > { %s2267_s28 = sshll.u32 %s2761_s25, 8  ;;  %s447_s29 = scalar_lea.vmem [#allocation4], %s2188_s16 }
 0x40e   : > { %s2065_s19 = sshll.u32 %s447_s29, 4  ;;  %s3002_s17 = scalar_lea.hbm %s3064_s12, %s2267_s28  ;;  %s3004_s19 = int_to_ptr.vmem [resolvable:$true] %s2065_s19 }
 0x40f   : > { %s2603_s16 = scalar_lea.vmem %s3004_s19, 256  ;;  %s2674_s5 = smov [#allocation4]  }
 0x410   : > { %p2604_p1 = scmp.ne.s32.totalorder %s3004_s19, %s2603_s16  ;;  %s2607_s15 = sshll.u32 %s2674_s5, 4  ;;  %s2608_s15 = int_to_ptr.vmem [resolvable:$false] %s2607_s15 }
 0x411   : > { %s2609_s28 = scalar_lea.vmem %s2608_s15, 512  ;;  %p2610_p4 = scmp.lt.s32.totalorder %s3004_s19, %s2608_s15 }
 0x412   : > { %p2605_p2 = pnand %p2604_p1, %p2778_p5  ;;  %p2611_p7 = scmp.lt.s32.totalorder %s2609_s28, %s2603_s16 }
 0x414   : > { %p2606_p3 = pneg %p2605_p2  ;;  %p2612_p8 = por %p2611_p7, %p2610_p4 }
 0x416   : > { %p2613_p9 = pnand %p2612_p8, %p2606_p3 }
 0x4bf   : > { %v2441_v59 = vpop.f32.mrb[22].mxu0 }
 0x4c0   : > { %v1753_v60 = vpop.f32.mrb[23].mxu0  ;;  %v2013_v62 = vsel %vm2005_vm3, %v2441_v59, 0.0 }
 0x4c1   : > { %v2006_v1 = vsel %vm2005_vm3, %v1753_v60, 0.0 }
 0x4c7   : > { %v2446_v61 = vpop.f32.mrb[18].mxu1 }
 0x4c8   : > { %v2014_v63 = vsel %vm2005_vm3, %v2446_v61, 0.0  ;;  %v1834_v0 = vpop.f32.mrb[19].mxu1 }
 0x4c9   : > { %v2015_v2 = vadd.f32 %v2014_v63, %v2013_v62  ;;  %v2007_v3 = vsel %vm2005_vm3, %v1834_v0, 0.0 }
 0x4ca   : > { %v2008_v4 = vadd.f32 %v2007_v3, %v2006_v1 }
 0x4cc   : > { %v2451_v5 = vpop.f32.mrb[24].mxu0 }
 0x4cd   : > { %v2016_v6 = vsel %vm2005_vm3, %v2451_v5, 0.0  ;;  %v1915_v7 = vpop.f32.mrb[25].mxu0 }
 0x4ce   : > { %v2017_v8 = vadd.f32 %v2016_v6, %v2015_v2  ;;  %v2009_v9 = vsel %vm2005_vm3, %v1915_v7, 0.0 }
 0x4cf   : > { %v2010_v10 = vadd.f32 %v2009_v9, %v2008_v4 }
 0x4d0   : > { %v2456_v11 = vpop.f32.mrb[20].mxu1 }
 0x4d1   : > { %v2018_v13 = vsel %vm2005_vm3, %v2456_v11, 0.0  ;;  %v1996_v14 = vpop.f32.mrb[21].mxu1 }
 0x4d2   : > { %v2019_v15 = vadd.f32 %v2018_v13, %v2017_v8  ;;  %v2011_v16 = vsel %vm2005_vm3, %v1996_v14, 0.0 }
 0x4d3   : > { %v2012_v17 = vadd.f32 %v2011_v16, %v2010_v10 }
 0x4d4   : > { %v2027_v18 = vadd.f32 %v2254_v12, %v2019_v15 }
 0x4d5   : > { %v2026_v19 = vadd.f32 %v2254_v12, %v2012_v17 }
 0x4d6   : > { %2029 = vst.msk [vmem:[%s447_s29 + $0x8] sm:$0xff] %vm2005_vm3, %v2027_v18 }
 0x4d7   : > { %2028 = vst.msk [vmem:[%s447_s29] sm:$0xff] %vm2005_vm3, %v2026_v19 }
 0x4d8   : > { %2616 = shalt.err (!%p2613_p9)
}
 0x4d9   : > { %s2617_s29 = scalar_lea.hbm %s3002_s17, 256  ;;  %s2621_s5 = scalar_lea.hbm %s3064_s12, 512 }
 0x4da   : > { %p2618_p10 = scmp.ne.s32.totalorder %s3002_s17, %s2617_s29  ;;  %p2622_p13 = scmp.lt.u32.totalorder %s3002_s17, %s3064_s12 }
 0x4db   : > { %p2623_p0 = scmp.lt.u32.totalorder %s2621_s5, %s2617_s29  ;;  %p2625_p2 = scmp.lt.u32.totalorder %s2617_s29, %s3002_s17 }
 0x4dc   : > { %p2619_p11 = pnand %p2618_p10, %p2778_p5 }
 0x4dd   : > { %p2624_p1 = por %p2623_p0, %p2622_p13 }
 0x4de   : > { %p2620_p12 = pneg %p2619_p11 }
 0x4df   : > { %p2626_p3 = por %p2625_p2, %p2624_p1 }
 0x4e1   : > { %p2627_p4 = pnand %p2626_p3, %p2620_p12 }
 0x4e3   : > { %2630 = shalt.err (!%p2627_p4)
}
 0x4e4   : > { %s3075_s16 = smov 128   ;;  %s3076_s28 = scalar_lea.sflag [#allocation5], %s2899_s18 }
 0x4e5   : > { %2498 = dma.vmem_to_hbm [thread:$0]  (%p2778_p5), %s3004_s19, 256, %s3002_s17, %s3076_s28, %s3075_s16, %s3075_s16, %s2673_s26  }
 0x4e6 PF: > { %p2508_p7 = scmp.ge.s32.totalorder %s2669_s24, 2  ;;  %s2080_s25 = sand.u32 1, %s2657_s21  }
 0x4e7   : > { %s2081_s29 = scalar_lea.sflag [#allocation3], %s2080_s25 }
 0x4e8   : > { %p2502_p8 = pnand %p2508_p7, %p2782_p6 }
 0x4ea   : > { %2648 = dma.done.wait (!%p2502_p8), %s2081_s29, 1024  }
 0x4eb   : > { %2650 = vsyncadd (!%p2502_p8), %s2081_s29, 4294966272  ;;  %s2090_s13 = scalar_lea.sflag [#allocation5], %s2080_s25 }
 0x4ec   : > { %2652 = dma.done.wait (!%p2502_p8), %s2090_s13, 256  }
 0x4ed   : > { %2654 = vsyncadd (!%p2502_p8), %s2090_s13, 4294967040  ;;  %p26_p5 = scmp.ge.s32.totalorder %s2765_s27, 4   ;;  %s3077_s21 = smov %s2661_s22 }
 0x4ee   : > { %s3078_s22 = smov %s2665_s23  ;;  %s3079_s23 = smov %s2776_s30 }
 0x4ef   : > { %s3080_s24 = smov %s2765_s27  ;;  %28 = sbr.rel (!%p26_p5) target bundleno = 8 (0x8), region = 122 }
 0x4f6   :  { %2095 = vsyncpa [#allocation3], 1 }
 0x4f7   :  { %2097 = vsyncpa [#allocation3 + $0x1], 1 }
 0x4f8   :  { %2098 = vsyncpa [#allocation5], 1 }
 0x4f9   :  { %2100 = vsyncpa [#allocation5 + $0x1], 1 }

</bundles_post_ra>
